<compile_context>
chip_gen: v6e
topology: v6e:2x2x1
jax: 0.10.0
libtpu: 0.0.40
codegen_flags: <defaults>
</compile_context>

<pallas_src>
import jax
import jax.numpy as jnp
from jax.experimental import pallas as pl
from jax.experimental.pallas import tpu as pltpu


_TILE_B_MAX = 4096   # per review: size so grid has ~2-8 steps; VMEM stays tiny
_LANE = 128


def _round_up(x: int, m: int) -> int:
    return ((x + m - 1) // m) * m


def _choose_tile(batch: int):
    """Batch-tile (lane) size + grid length.

    * batch < 256: one full-extent block (block dim == array dim, so no
      128-lane alignment requirement), grid of 1.
    * otherwise: >= 2 grid steps (v7x megacore gets work on both TCs), tiles
      a multiple of 128 lanes, capped at _TILE_B_MAX.  The last block may be
      partial; Pallas masks the out-of-range lanes on the output store.
    """
    if batch < 2 * _LANE:
        return batch, 1
    tile = min(_TILE_B_MAX, _round_up(pl.cdiv(batch, 2), _LANE))
    return tile, pl.cdiv(batch, tile)


# ----------------------------------------------------------------------------
# Kernel
# ----------------------------------------------------------------------------
def _make_fused_kernel(n_layers: int):
    """Kernel refs: (state_t, action_t, Ws, Wa, b0, W1, b1, ..., q_out).

    state_t: (state_dim, tile_b), action_t: (action_dim, tile_b)
    Ws: (2h0, state_dim), Wa: (2h0, action_dim), b0: (2h0, 1)
    Wi: (2h_i, 2h_{i-1}),  bi: (2h_i, 1)
    q_out: (2, tile_b)  -- row 0 = q0, row 1 = q1 (lane-dense store)
    """

    def kernel(*refs):
        state_ref, action_ref = refs[0], refs[1]
        q_ref = refs[-1]

        ws = refs[2][...]
        wa = refs[3][...]
        b0 = refs[4][...]

        # First (split) layer: the state/action concat never exists; two
        # partial matmuls accumulate into the same f32 result.
        x = (jnp.dot(ws, state_ref[...], preferred_element_type=jnp.float32)
             + jnp.dot(wa, action_ref[...], preferred_element_type=jnp.float32)
             + b0)
        if n_layers > 1:
            x = jnp.maximum(x, 0.0)

        # Remaining fused (block-diagonal) layers, batch on lanes throughout.
        for i in range(1, n_layers):
            w = refs[5 + 2 * (i - 1)][...]
            b = refs[6 + 2 * (i - 1)][...]
            x = jnp.dot(w, x, preferred_element_type=jnp.float32) + b
            if i < n_layers - 1:
                x = jnp.maximum(x, 0.0)

        q_ref[...] = x.astype(q_ref.dtype)   # (2, tile_b), lane-dense

    return kernel


def _resident_spec(shape):
    """Full-extent block whose index_map ignores the batch grid index, so the
    parameter stays VMEM-resident across all grid steps (no re-DMA)."""
    return pl.BlockSpec(shape, lambda b: (0, 0))


# ----------------------------------------------------------------------------
# Wrapper
# ----------------------------------------------------------------------------
@jax.jit
def twin_critic_forward(state, action, packed_params):
    """state: (B, state_dim), action: (B, action_dim).
    packed_params = pack_twin_params(...).  Returns (q0, q1), each (B, 1)."""
    n_layers = (len(packed_params) - 3) // 2 + 1
    B, state_dim = state.shape
    action_dim = action.shape[1]

    # Layout plumbing only: present batch on the lane axis to the kernel.
    state_t = state.T          # (state_dim, B)
    action_t = action.T        # (action_dim, B)

    tile_b, grid_b = _choose_tile(B)

    in_specs = [
        pl.BlockSpec((state_dim, tile_b), lambda b: (0, b)),
        pl.BlockSpec((action_dim, tile_b), lambda b: (0, b)),
    ] + [_resident_spec(p.shape) for p in packed_params]

    out_specs = pl.BlockSpec((2, tile_b), lambda b: (0, b))
    out_shape = jax.ShapeDtypeStruct((2, B), jnp.float32)

    # Advisory cost estimate so XLA schedules surrounding ops sensibly.
    w_shapes = ([packed_params[0].shape, packed_params[1].shape]
                + [packed_params[3 + 2 * k].shape for k in range(n_layers - 1)])
    flops = 2 * B * sum(int(s[0]) * int(s[1]) for s in w_shapes)
    bytes_accessed = 4 * (B * (state_dim + action_dim + 2)
                          + sum(int(p.size) for p in packed_params))
    cost = pl.CostEstimate(flops=flops, transcendentals=0,
                           bytes_accessed=bytes_accessed)

    kernel = _make_fused_kernel(n_layers)

    q = pl.pallas_call(
        kernel,
        out_shape=out_shape,
        grid=(grid_b,),
        in_specs=in_specs,
        out_specs=out_specs,
        compiler_params=pltpu.CompilerParams(
            dimension_semantics=("parallel",)   # v7x: both TCs take batch tiles
        ),
        cost_estimate=cost,
    )(state_t, action_t, *packed_params)

    q0 = q[0, :].reshape(B, 1)
    q1 = q[1, :].reshape(B, 1)
    return q0, q1


# ----------------------------------------------------------------------------
# Parameter construction + one-time packing for the fused-head kernel
# ----------------------------------------------------------------------------
def init_twin_critic_params(key, state_dim, action_dim, hidden_sizes,
                            final_layer_scale):
    """Per-head params in PyTorch nn.Linear layout: W (out, in), b (out,)."""
    layer_sizes = [state_dim + action_dim] + list(hidden_sizes) + [1]
    n_layers = len(layer_sizes) - 1

    def make_net(key):
        ws, bs = [], []
        for i in range(n_layers):
            fan_in, fan_out = layer_sizes[i], layer_sizes[i + 1]
            key, kw, kb = jax.random.split(key, 3)
            bound = 1.0 / (fan_in ** 0.5)
            w = jax.random.uniform(kw, (fan_out, fan_in), jnp.float32,
                                   -bound, bound)
            b = jax.random.uniform(kb, (fan_out,), jnp.float32, -bound, bound)
            if i == n_layers - 1:
                w = w * final_layer_scale
                b = b * final_layer_scale
            ws.append(w)
            bs.append(b)
        return ws, bs

    k0, k1 = jax.random.split(key)
    net0 = make_net(k0)
    net1 = make_net(k1)
    return net0, net1, n_layers


def _block_diag(a, b):
    top = jnp.concatenate([a, jnp.zeros((a.shape[0], b.shape[1]), a.dtype)], 1)
    bot = jnp.concatenate([jnp.zeros((b.shape[0], a.shape[1]), b.dtype), b], 1)
    return jnp.concatenate([top, bot], axis=0)


def pack_twin_params(net0, net1, state_dim):
    """One-time fuse of the two heads (weights kept in (out, in) layout):
       layer 0 -> Ws (2h0, state_dim), Wa (2h0, action_dim), b0 (2h0, 1)
       layer i -> block-diag W (2h_i, 2h_{i-1}), b (2h_i, 1).
    NOTE: block-diag packing is only used because 2*h <= 128 here (zeros sit
    in MXU padding and are free); for 2*h > 128 use two per-head dots."""
    w0s, b0s = net0
    w1s, b1s = net1
    n_layers = len(w0s)

    packed = []
    w_cat = jnp.concatenate([w0s[0], w1s[0]], axis=0)          # (2h0, in)
    packed.append(w_cat[:, :state_dim])                        # Ws
    packed.append(w_cat[:, state_dim:])                        # Wa
    packed.append(jnp.concatenate([b0s[0], b1s[0]])[:, None])  # (2h0, 1)

    for i in range(1, n_layers):
        packed.append(_block_diag(w0s[i], w1s[i]))              # (2h_i, 2h_{i-1})
        packed.append(jnp.concatenate([b0s[i], b1s[i]])[:, None])
    return tuple(packed)


# Pure-JAX reference (unpacked per-head params, PyTorch semantics).
def reference_forward(state, action, net0, net1):
    sa = jnp.concatenate([state, action], axis=1)

    def run(net):
        ws, bs = net
        x = sa
        n = len(ws)
        for i in range(n):
            x = x @ ws[i].T + bs[i]
            if i < n - 1:
                x = jnp.maximum(x, 0.0)
        return x

    return run(net0), run(net1)


# ----------------------------------------------------------------------------
if __name__ == "__main__":
    state_dim, action_dim = 16, 8
    hidden_sizes = (32, 32)
    final_layer_scale = 0.1

    key = jax.random.PRNGKey(0)
    kp, kd = jax.random.split(key)

    net0, net1, n_layers = init_twin_critic_params(
        kp, state_dim, action_dim, hidden_sizes, final_layer_scale)
    packed_params = pack_twin_params(net0, net1, state_dim)

    # batch=8 exercises the single-block path; batch=300 exercises the
    # multi-step grid with a partial (masked) last block.
    for batch in (8, 300):
        ks, ka = jax.random.split(jax.random.fold_in(kd, batch))
        state = jax.random.normal(ks, (batch, state_dim), jnp.float32)
        action = jax.random.normal(ka, (batch, action_dim), jnp.float32)

        q0, q1 = twin_critic_forward(state, action, packed_params)
        jax.block_until_ready((q0, q1))

        r0, r1 = reference_forward(state, action, net0, net1)
        assert q0.shape == (batch, 1) and q1.shape == (batch, 1)
        # 1e-4 tolerance: f32 MXU multi-pass rounding + different summation
        # order (split first layer, fused heads) vs the reference.
        assert jnp.allclose(q0, r0, atol=1e-4, rtol=1e-4), "q0 mismatch"
        assert jnp.allclose(q1, r1, atol=1e-4, rtol=1e-4), "q1 mismatch"

    print("KERNEL_OK")
</pallas_src>

<mosaic_0001>
module attributes {stable_mosaic.version = 11 : i64} {
  func.func @kernel(%arg0: i32, %arg1: memref<16x8xf32, #tpu.memory_space<vmem>>, %arg2: memref<8x8xf32, #tpu.memory_space<vmem>>, %arg3: memref<64x16xf32, #tpu.memory_space<vmem>>, %arg4: memref<64x8xf32, #tpu.memory_space<vmem>>, %arg5: memref<64x1xf32, #tpu.memory_space<vmem>>, %arg6: memref<64x64xf32, #tpu.memory_space<vmem>>, %arg7: memref<64x1xf32, #tpu.memory_space<vmem>>, %arg8: memref<2x64xf32, #tpu.memory_space<vmem>>, %arg9: memref<2x1xf32, #tpu.memory_space<vmem>>, %arg10: memref<2x8xf32, #tpu.memory_space<vmem>>) attributes {dimension_semantics = [#tpu.dimension_semantics<parallel>], iteration_bounds = array<i64: 1>, scalar_prefetch = 0 : i64, scratch_operands = 0 : i64, tpu.core_type = #tpu.core_type<tc>, window_params = [{transform_indices = @transform_0, window_bounds = array<i64: 16, 8>}, {transform_indices = @transform_1, window_bounds = array<i64: 8, 8>}, {pipeline_mode = #tpu.pipeline_mode<synchronous>, transform_indices = @transform_2, window_bounds = array<i64: 64, 16>}, {pipeline_mode = #tpu.pipeline_mode<synchronous>, transform_indices = @transform_3, window_bounds = array<i64: 64, 8>}, {pipeline_mode = #tpu.pipeline_mode<synchronous>, transform_indices = @transform_4, window_bounds = array<i64: 64, 1>}, {pipeline_mode = #tpu.pipeline_mode<synchronous>, transform_indices = @transform_5, window_bounds = array<i64: 64, 64>}, {pipeline_mode = #tpu.pipeline_mode<synchronous>, transform_indices = @transform_6, window_bounds = array<i64: 64, 1>}, {pipeline_mode = #tpu.pipeline_mode<synchronous>, transform_indices = @transform_7, window_bounds = array<i64: 2, 64>}, {pipeline_mode = #tpu.pipeline_mode<synchronous>, transform_indices = @transform_8, window_bounds = array<i64: 2, 1>}, {transform_indices = @transform_9, window_bounds = array<i64: 2, 8>}]} {
    %c0 = arith.constant 0 : index
    %c0_0 = arith.constant 0 : index
    %0 = vector.load %arg3[%c0, %c0_0] : memref<64x16xf32, #tpu.memory_space<vmem>>, vector<64x16xf32>
    %c0_1 = arith.constant 0 : index
    %c0_2 = arith.constant 0 : index
    %1 = vector.load %arg4[%c0_1, %c0_2] : memref<64x8xf32, #tpu.memory_space<vmem>>, vector<64x8xf32>
    %c0_3 = arith.constant 0 : index
    %c0_4 = arith.constant 0 : index
    %2 = vector.load %arg5[%c0_3, %c0_4] : memref<64x1xf32, #tpu.memory_space<vmem>>, vector<64x1xf32>
    %c0_5 = arith.constant 0 : index
    %c0_6 = arith.constant 0 : index
    %3 = vector.load %arg1[%c0_5, %c0_6] : memref<16x8xf32, #tpu.memory_space<vmem>>, vector<16x8xf32>
    %cst = arith.constant dense<0.000000e+00> : vector<64x8xf32>
    %4 = tpu.matmul %0, %3, %cst {dimension_numbers = #tpu.dot_dimension_numbers<[1], [0], [0], [1], [0, 0, 1, 1], [], []>} : vector<64x16xf32>, vector<16x8xf32>, vector<64x8xf32> -> vector<64x8xf32>
    %c0_7 = arith.constant 0 : index
    %c0_8 = arith.constant 0 : index
    %5 = vector.load %arg2[%c0_7, %c0_8] : memref<8x8xf32, #tpu.memory_space<vmem>>, vector<8x8xf32>
    %cst_9 = arith.constant dense<0.000000e+00> : vector<64x8xf32>
    %6 = tpu.matmul %1, %5, %cst_9 {dimension_numbers = #tpu.dot_dimension_numbers<[1], [0], [0], [1], [0, 0, 1, 1], [], []>} : vector<64x8xf32>, vector<8x8xf32>, vector<64x8xf32> -> vector<64x8xf32>
    %7 = arith.addf %4, %6 : vector<64x8xf32>
    %8 = vector.broadcast %2 : vector<64x1xf32> to vector<64x8xf32>
    %9 = arith.addf %7, %8 : vector<64x8xf32>
    %cst_10 = arith.constant 0.000000e+00 : f32
    %10 = vector.broadcast %cst_10 : f32 to vector<64x8xf32>
    %11 = arith.maximumf %9, %10 : vector<64x8xf32>
    %c0_11 = arith.constant 0 : index
    %c0_12 = arith.constant 0 : index
    %12 = vector.load %arg6[%c0_11, %c0_12] : memref<64x64xf32, #tpu.memory_space<vmem>>, vector<64x64xf32>
    %c0_13 = arith.constant 0 : index
    %c0_14 = arith.constant 0 : index
    %13 = vector.load %arg7[%c0_13, %c0_14] : memref<64x1xf32, #tpu.memory_space<vmem>>, vector<64x1xf32>
    %cst_15 = arith.constant dense<0.000000e+00> : vector<64x8xf32>
    %14 = tpu.matmul %12, %11, %cst_15 {dimension_numbers = #tpu.dot_dimension_numbers<[1], [0], [0], [1], [0, 0, 1, 1], [], []>} : vector<64x64xf32>, vector<64x8xf32>, vector<64x8xf32> -> vector<64x8xf32>
    %15 = vector.broadcast %13 : vector<64x1xf32> to vector<64x8xf32>
    %16 = arith.addf %14, %15 : vector<64x8xf32>
    %cst_16 = arith.constant 0.000000e+00 : f32
    %17 = vector.broadcast %cst_16 : f32 to vector<64x8xf32>
    %18 = arith.maximumf %16, %17 : vector<64x8xf32>
    %c0_17 = arith.constant 0 : index
    %c0_18 = arith.constant 0 : index
    %19 = vector.load %arg8[%c0_17, %c0_18] : memref<2x64xf32, #tpu.memory_space<vmem>>, vector<2x64xf32>
    %c0_19 = arith.constant 0 : index
    %c0_20 = arith.constant 0 : index
    %20 = vector.load %arg9[%c0_19, %c0_20] : memref<2x1xf32, #tpu.memory_space<vmem>>, vector<2x1xf32>
    %cst_21 = arith.constant dense<0.000000e+00> : vector<2x8xf32>
    %21 = tpu.matmul %19, %18, %cst_21 {dimension_numbers = #tpu.dot_dimension_numbers<[1], [0], [0], [1], [0, 0, 1, 1], [], []>} : vector<2x64xf32>, vector<64x8xf32>, vector<2x8xf32> -> vector<2x8xf32>
    %22 = vector.broadcast %20 : vector<2x1xf32> to vector<2x8xf32>
    %23 = arith.addf %21, %22 : vector<2x8xf32>
    %c0_22 = arith.constant 0 : index
    %c0_23 = arith.constant 0 : index
    %24 = vector.load %arg10[%c0_22, %c0_23] : memref<2x8xf32, #tpu.memory_space<vmem>>, vector<2x8xf32>
    tpu.vector_store %arg10[%c0_22, %c0_23], %23 {strides = array<i32>} : memref<2x8xf32, #tpu.memory_space<vmem>>, vector<2x8xf32>,
    return
  }
  func.func @transform_0(%arg0: i32) -> (i32, i32) {
    %c0_i32 = arith.constant 0 : i32
    %c0_i32_0 = arith.constant 0 : i32
    return %c0_i32, %arg0 : i32, i32
  }
  func.func @transform_1(%arg0: i32) -> (i32, i32) {
    %c0_i32 = arith.constant 0 : i32
    %c0_i32_0 = arith.constant 0 : i32
    return %c0_i32, %arg0 : i32, i32
  }
  func.func @transform_2(%arg0: i32) -> (i32, i32) {
    %c0_i32 = arith.constant 0 : i32
    %c0_i32_0 = arith.constant 0 : i32
    %c0_i32_1 = arith.constant 0 : i32
    return %c0_i32, %c0_i32_0 : i32, i32
  }
  func.func @transform_3(%arg0: i32) -> (i32, i32) {
    %c0_i32 = arith.constant 0 : i32
    %c0_i32_0 = arith.constant 0 : i32
    %c0_i32_1 = arith.constant 0 : i32
    return %c0_i32, %c0_i32_0 : i32, i32
  }
  func.func @transform_4(%arg0: i32) -> (i32, i32) {
    %c0_i32 = arith.constant 0 : i32
    %c0_i32_0 = arith.constant 0 : i32
    %c0_i32_1 = arith.constant 0 : i32
    return %c0_i32, %c0_i32_0 : i32, i32
  }
  func.func @transform_5(%arg0: i32) -> (i32, i32) {
    %c0_i32 = arith.constant 0 : i32
    %c0_i32_0 = arith.constant 0 : i32
    %c0_i32_1 = arith.constant 0 : i32
    return %c0_i32, %c0_i32_0 : i32, i32
  }
  func.func @transform_6(%arg0: i32) -> (i32, i32) {
    %c0_i32 = arith.constant 0 : i32
    %c0_i32_0 = arith.constant 0 : i32
    %c0_i32_1 = arith.constant 0 : i32
    return %c0_i32, %c0_i32_0 : i32, i32
  }
  func.func @transform_7(%arg0: i32) -> (i32, i32) {
    %c0_i32 = arith.constant 0 : i32
    %c0_i32_0 = arith.constant 0 : i32
    %c0_i32_1 = arith.constant 0 : i32
    return %c0_i32, %c0_i32_0 : i32, i32
  }
  func.func @transform_8(%arg0: i32) -> (i32, i32) {
    %c0_i32 = arith.constant 0 : i32
    %c0_i32_0 = arith.constant 0 : i32
    %c0_i32_1 = arith.constant 0 : i32
    return %c0_i32, %c0_i32_0 : i32, i32
  }
  func.func @transform_9(%arg0: i32) -> (i32, i32) {
    %c0_i32 = arith.constant 0 : i32
    %c0_i32_0 = arith.constant 0 : i32
    return %c0_i32, %arg0 : i32, i32
  }
}

</mosaic_0001>

<bundles_post_ra>
// kernel: twin_critic_forward.1
= control target key start
LH: loop header
LB: loop body
LE: loop exit
PB: predicated region body
PF: predicated region fallthrough
CT: control target
= control target key end

     0   :  { %vm59_vm0 = vcmask 64512   ;;  %v806_v3 = vmov 0   ;;  %vm189_vm1 = vcmask 130048   ;;  %vm431_vm2 = vcmask 523264   ;;  %s1022_s1 = inlined_call_operand.vmem [shape: f32[8,8], index: 1, kind: input, shape index: {}]   ;;  %s1023_s0 = inlined_call_operand.vmem [shape: f32[16,8], index: 0, kind: input, shape index: {}]   ;;  %s1024_s3 = inlined_call_operand.vmem [shape: f32[64,8], index: 3, kind: input, shape index: {}]   ;;  %s1025_s2 = inlined_call_operand.vmem [shape: f32[64,16], index: 2, kind: input, shape index: {}]   ;;  %s1026_s4 = inlined_call_operand.vmem [shape: f32[64,1], index: 4, kind: input, shape index: {}]   ;;  %s1027_s6 = inlined_call_operand.vmem [shape: f32[64,1], index: 6, kind: input, shape index: {}]   ;;  %s1028_s8 = inlined_call_operand.vmem [shape: f32[2,1], index: 8, kind: input, shape index: {}]   ;;  %s1029_s5 = inlined_call_operand.vmem [shape: f32[64,64], index: 5, kind: input, shape index: {}]   ;;  %s1030_s7 = inlined_call_operand.vmem [shape: f32[2,64], index: 7, kind: input, shape index: {}]   ;;  %s1031_s9 = inlined_call_operand.vmem [shape: f32[2,8], index: 9, kind: output, shape index: {}]  }
   0x1   :  { %v58_v0 = vld [vmem:[%s1022_s1] sm:$0xff]  ;;  %v57_v1 = vld [vmem:[%s1023_s0 + $0x8] sm:$0xff]  ;;  %804 = vset.pattern.permute.xlu0 %v806_v3  ;;  %805 = vset.pattern.permute.xlu1 %v806_v3  ;;  %v42_v7 = vld [vmem:[%s1024_s3 + $0x10] sm:$0xff]  ;;  %vm808_vm3 = vmmov 0   ;;  %vm649_vm4 = vcmask 58368  }
   0x2   :  { %v40_v2 = vld [vmem:[%s1024_s3] sm:$0xff]  ;;  %724 = vmatprep.subr.mxu0 %v58_v0  ;;  %738 = vmatprep.subr.mxu1 %v57_v1  ;;  %v41_v4 = vld [vmem:[%s1024_s3 + $0x8] sm:$0xff]  ;;  %v43_v9 = vld [vmem:[%s1024_s3 + $0x18] sm:$0xff] }
   0x3   :  { %v56_v5 = vld [vmem:[%s1023_s0] sm:$0xff]  ;;  %725 = vmatpush3.msra.mxu0 %v58_v0  ;;  %726 = vmatprep.mubr.msk.f32.mxu0 %vm59_vm0, %v40_v2  ;;  %v33_v8 = vld [vmem:[%s1025_s2 + $0x8] sm:$0xff]  ;;  %v34_v10 = vld [vmem:[%s1025_s2 + $0x10] sm:$0xff] }
   0x4   :  { %v32_v6 = vld [vmem:[%s1025_s2] sm:$0xff]  ;;  %739 = vmatpush3.msra.mxu1 %v57_v1  ;;  %727 = vmatmul.mubr.msk.f32.vlgmr.msra.gmra.mxu0 %vm59_vm0, %v41_v4  ;;  %v55_v12 = vld [vmem:[%s1026_s4 + $0x38] sm:$0xff]  ;;  %v53_v14 = vld [vmem:[%s1026_s4 + $0x28] sm:$0xff] }
   0x5   :  { %740 = vmatprep.subr.mxu1 %v56_v5  ;;  %742 = vmatprep.mubr.msk.f32.mxu1 %vm189_vm1, %v32_v6  ;;  %v44_v11 = vld [vmem:[%s1024_s3 + $0x20] sm:$0xff]  ;;  %v35_v13 = vld [vmem:[%s1025_s2 + $0x18] sm:$0xff]  ;;  %v45_v15 = vld [vmem:[%s1024_s3 + $0x28] sm:$0xff] }
   0x6   :  { %741 = vmatpush3.msra.mxu1 %v56_v5  ;;  %729 = vmatprep.mubr.msk.f32.mxu0 %vm59_vm0, %v42_v7  ;;  %v36_v16 = vld [vmem:[%s1025_s2 + $0x20] sm:$0xff]  ;;  %v46_v17 = vld [vmem:[%s1024_s3 + $0x30] sm:$0xff]  ;;  %v37_v20 = vld [vmem:[%s1025_s2 + $0x28] sm:$0xff] }
   0x7   :  { %743 = vmatmul.mubr.msk.f32.vlgmr.msra.gmra.mxu1 %vm189_vm1, %v33_v8  ;;  %356 = vperm.xlu0 %804, %v55_v12   ;;  %v54_v18 = vld [vmem:[%s1026_s4 + $0x30] sm:$0xff]  ;;  %v52_v19 = vld [vmem:[%s1026_s4 + $0x20] sm:$0xff]  ;;  %v47_v21 = vld [vmem:[%s1024_s3 + $0x38] sm:$0xff] }
   0x8   :  { %730 = vmatmul.mubr.msk.f32.gmra.mxu0 %vm59_vm0, %v43_v9  ;;  %745 = vmatprep.mubr.msk.f32.mxu1 %vm189_vm1, %v34_v10  ;;  %v38_v22 = vld [vmem:[%s1025_s2 + $0x30] sm:$0xff]  ;;  %v51_v23 = vld [vmem:[%s1026_s4 + $0x18] sm:$0xff]  ;;  %v49_v26 = vld [vmem:[%s1026_s4 + $0x8] sm:$0xff] }
   0x9   :  { %732 = vmatprep.mubr.msk.f32.mxu0 %vm59_vm0, %v44_v11  ;;  %346 = vperm.xlu1 %805, %v53_v14   ;;  %v50_v24 = vld [vmem:[%s1026_s4 + $0x10] sm:$0xff]  ;;  %v39_v25 = vld [vmem:[%s1025_s2 + $0x38] sm:$0xff]  ;;  %v48_v27 = vld [vmem:[%s1026_s4] sm:$0xff] }
   0xa   :  { %v390_v28 = vld [vmem:[%s1027_s6 + $0x38] sm:$0xff]  ;;  %v389_v29 = vld [vmem:[%s1027_s6 + $0x30] sm:$0xff]  ;;  %v388_v30 = vld [vmem:[%s1027_s6 + $0x28] sm:$0xff] }
   0xb   :  { %746 = vmatmul.mubr.msk.f32.gmra.mxu1 %vm189_vm1, %v35_v13  ;;  %351 = vperm.xlu0 %804, %v54_v18   ;;  %v387_v31 = vld [vmem:[%s1027_s6 + $0x20] sm:$0xff]  ;;  %v386_v32 = vld [vmem:[%s1027_s6 + $0x18] sm:$0xff]  ;;  %v385_v33 = vld [vmem:[%s1027_s6 + $0x10] sm:$0xff] }
   0xc   :  { %733 = vmatmul.mubr.msk.f32.gmra.mxu0 %vm59_vm0, %v45_v15  ;;  %748 = vmatprep.mubr.msk.f32.mxu1 %vm189_vm1, %v36_v16  ;;  %v384_v34 = vld [vmem:[%s1027_s6 + $0x8] sm:$0xff]  ;;  %v383_v35 = vld [vmem:[%s1027_s6] sm:$0xff] }
   0xd   :  { %735 = vmatprep.mubr.msk.f32.mxu0 %vm59_vm0, %v46_v17  ;;  %341 = vperm.xlu1 %805, %v52_v19   ;;  %v570_v36 = vld [vmem:[%s1028_s8] sm:$0x3] }
   0xe   :  { %v375_v37 = vld [vmem:[%s1029_s5] sm:$0xff] }
   0xf   :  { %749 = vmatmul.mubr.msk.f32.gmra.mxu1 %vm189_vm1, %v37_v20  ;;  %336 = vperm.xlu0 %804, %v51_v23   ;;  %v377_v23 = vld [vmem:[%s1029_s5 + $0x10] sm:$0xff] }
  0x10   :  { %736 = vmatmul.mubr.msk.f32.gmra.mxu0 %vm59_vm0, %v47_v21  ;;  %751 = vmatprep.mubr.msk.f32.mxu1 %vm189_vm1, %v38_v22  ;;  %v376_v22 = vld [vmem:[%s1029_s5 + $0x8] sm:$0xff] }
  0x11   :  { %331 = vperm.xlu1 %805, %v50_v24   ;;  %770 = vmatprep.mubr.msk.f32.mxu0 %vm431_vm2, %v375_v37  ;;  %v378_v24 = vld [vmem:[%s1029_s5 + $0x18] sm:$0xff] }
  0x13   :  { %752 = vmatmul.mubr.msk.f32.gmra.mxu1 %vm189_vm1, %v39_v25  ;;  %326 = vperm.xlu0 %804, %v49_v26   ;;  %v379_v25 = vld [vmem:[%s1029_s5 + $0x20] sm:$0xff]  ;;  %v380_v26 = vld [vmem:[%s1029_s5 + $0x28] sm:$0xff] }
  0x15   :  { %321 = vperm.xlu1 %805, %v48_v27   ;;  %v381_v27 = vld [vmem:[%s1029_s5 + $0x30] sm:$0xff] }
  0x17   :  { %428 = vperm.xlu0 %804, %v390_v28   ;;  %v382_v28 = vld [vmem:[%s1029_s5 + $0x38] sm:$0xff] }
  0x19   :  { %423 = vperm.xlu1 %805, %v389_v29   ;;  %v807_v29 = vmov 0.0  }
  0x1a   :  { %782 = vmatprep.subr.mxu1 %v807_v29  ;;  %798 = vmatprep.mubr.msk.f32.mxu1 %vm808_vm3, %v807_v29 }
  0x1b   :  { %418 = vperm.xlu0 %804, %v388_v30  }
  0x1d   :  { %413 = vperm.xlu1 %805, %v387_v31  }
  0x1f   :  { %408 = vperm.xlu0 %804, %v386_v32  }
  0x21   :  { %403 = vperm.xlu1 %805, %v385_v33  }
  0x23   :  { %398 = vperm.xlu0 %804, %v384_v34  }
  0x25   :  { %393 = vperm.xlu1 %805, %v383_v35  }
  0x27   :  { %573 = vperm.xlu0 %804, %v570_v36  }
  0x82   :  { %v357_v46 = vpop.permute.xlu0 %356 }
  0x84   :  { %v347_v48 = vpop.permute.xlu1 %346 }
  0x86   :  { %v352_v53 = vpop.permute.xlu0 %351 }
  0x88   :  { %v342_v55 = vpop.permute.xlu1 %341 }
  0x8a   :  { %v337_v3 = vpop.permute.xlu0 %336 }
  0x8c   :  { %v332_v7 = vpop.permute.xlu1 %331 }
  0x8e   :  { %v327_v14 = vpop.permute.xlu0 %326 }
  0x90   :  { %v322_v17 = vpop.permute.xlu1 %321 }
  0x92   :  { %v429_v32 = vpop.permute.xlu0 %428 }
  0x94   :  { %v424_v34 = vpop.permute.xlu1 %423 }
  0x96   :  { %v419_v37 = vpop.permute.xlu0 %418 }
  0xc4   :  { %v728_v38 = vpop.f32.mrf.mxu0 }
  0xc6   :  { %v150_v39 = vpop.f32.mrf.mxu0 }
  0xc7   :  { %v744_v40 = vpop.f32.mrf.mxu1 }
  0xc8   :  { %v731_v41 = vpop.f32.mrf.mxu0  ;;  %v286_v8 = vadd.f32 %v744_v40, %v728_v38 }
  0xc9   :  { %v280_v42 = vpop.f32.mrf.mxu1 }
  0xca   :  { %v160_v43 = vpop.f32.mrf.mxu0  ;;  %v281_v11 = vadd.f32 %v280_v42, %v150_v39  ;;  %v360_v15 = vadd.f32 %v327_v14, %v286_v8  ;;  %v414_v39 = vpop.permute.xlu1 %413 }
  0xcb   :  { %v747_v44 = vpop.f32.mrf.mxu1 }
  0xcc   :  { %v734_v45 = vpop.f32.mrf.mxu0  ;;  %v296_v63 = vadd.f32 %v747_v44, %v731_v41  ;;  %v359_v18 = vadd.f32 %v322_v17, %v281_v11  ;;  %v368_v20 = vmax.f32 %v360_v15, 0.0 }
  0xcd   :  { %v290_v47 = vpop.f32.mrf.mxu1 }
  0xce   :  { %v170_v49 = vpop.f32.mrf.mxu0  ;;  %v291_v4 = vadd.f32 %v290_v47, %v160_v43  ;;  %v362_v9 = vadd.f32 %v337_v3, %v296_v63  ;;  %v367_v21 = vmax.f32 %v359_v18, 0.0 }
  0xcf   :  { %v750_v50 = vpop.f32.mrf.mxu1 }
  0xd0   :  { %v737_v51 = vpop.f32.mrf.mxu0  ;;  %v306_v56 = vadd.f32 %v750_v50, %v734_v45  ;;  %v361_v12 = vadd.f32 %v332_v7, %v291_v4  ;;  %v370_v16 = vmax.f32 %v362_v9, 0.0 }
  0xd1   :  { %v300_v52 = vpop.f32.mrf.mxu1 }
  0xd2   :  { %v180_v58 = vpop.f32.mrf.mxu0  ;;  %v301_v60 = vadd.f32 %v300_v52, %v170_v49  ;;  %v364_v0 = vadd.f32 %v347_v48, %v306_v56  ;;  %v369_v19 = vmax.f32 %v361_v12, 0.0  ;;  %v404_v49 = vpop.permute.xlu1 %403 }
  0xd3   :  { %v753_v54 = vpop.f32.mrf.mxu1 }
  0xd4   :  { %v316_v57 = vadd.f32 %v753_v54, %v737_v51  ;;  %v363_v5 = vadd.f32 %v342_v55, %v301_v60  ;;  %v372_v10 = vmax.f32 %v364_v0, 0.0 }
  0xd5   :  { %v310_v59 = vpop.f32.mrf.mxu1 }
  0xd6   :  { %v366_v61 = vadd.f32 %v357_v46, %v316_v57  ;;  %v311_v62 = vadd.f32 %v310_v59, %v180_v58  ;;  %v371_v13 = vmax.f32 %v363_v5, 0.0  ;;  %v409_v46 = vpop.permute.xlu0 %408  ;;  %v394_v57 = vpop.permute.xlu1 %393 }
  0xd8   :  { %v374_v1 = vmax.f32 %v366_v61, 0.0  ;;  %v365_v2 = vadd.f32 %v352_v53, %v311_v62  ;;  %v569_v62 = vld [vmem:[%s1030_s7] sm:$0x3] }
  0xda   :  { %v373_v6 = vmax.f32 %v365_v2, 0.0  ;;  %754 = vmatprep.subr.mxu0 %v374_v1  ;;  %v399_v54 = vpop.permute.xlu0 %398 }
  0xdb   :  { %755 = vmatpush3.msra.mxu0 %v374_v1 }
  0xdc   :  { %756 = vmatprep.subr.mxu0 %v373_v6 }
  0xdd   :  { %757 = vmatpush3.msra.mxu0 %v373_v6 }
  0xde   :  { %758 = vmatprep.subr.mxu0 %v372_v10  ;;  %v574_v63 = vpop.permute.xlu0 %573 }
  0xdf   :  { %759 = vmatpush3.msra.mxu0 %v372_v10 }
  0xe0   :  { %760 = vmatprep.subr.mxu0 %v371_v13 }
  0xe1   :  { %761 = vmatpush3.msra.mxu0 %v371_v13 }
  0xe2   :  { %762 = vmatprep.subr.mxu0 %v370_v16 }
  0xe3   :  { %763 = vmatpush3.msra.mxu0 %v370_v16 }
  0xe4   :  { %764 = vmatprep.subr.mxu0 %v369_v19 }
  0xe5   :  { %765 = vmatpush3.msra.mxu0 %v369_v19 }
  0xe6   :  { %766 = vmatprep.subr.mxu0 %v368_v20 }
  0xe7   :  { %767 = vmatpush3.msra.mxu0 %v368_v20 }
  0xe8   :  { %768 = vmatprep.subr.mxu0 %v367_v21 }
  0xe9   :  { %769 = vmatpush3.msra.mxu0 %v367_v21 }
  0xea   :  { %771 = vmatmul.mubr.msk.f32.vlgmr.msra.gmra.mxu0 %vm431_vm2, %v376_v22 }
  0xeb   :  { %773 = vmatprep.mubr.msk.f32.mxu0 %vm431_vm2, %v377_v23 }
  0xee   :  { %774 = vmatmul.mubr.msk.f32.gmra.mxu0 %vm431_vm2, %v378_v24 }
  0xef   :  { %776 = vmatprep.mubr.msk.f32.mxu0 %vm431_vm2, %v379_v25 }
  0xf2   :  { %777 = vmatmul.mubr.msk.f32.gmra.mxu0 %vm431_vm2, %v380_v26 }
  0xf3   :  { %779 = vmatprep.mubr.msk.f32.mxu0 %vm431_vm2, %v381_v27 }
  0xf6   :  { %780 = vmatmul.mubr.msk.f32.gmra.mxu0 %vm431_vm2, %v382_v28 }
 0x1aa   :  { %v772_v30 = vpop.f32.mrf.mxu0 }
 0x1ab   :  { %v528_v55 = vadd.f32 %v772_v30, %v399_v54 }
 0x1ac   :  { %v522_v31 = vpop.f32.mrf.mxu0 }
 0x1ad   :  { %v523_v58 = vadd.f32 %v522_v31, %v394_v57  ;;  %v562_v60 = vmax.f32 %v528_v55, 0.0 }
 0x1ae   :  { %v775_v33 = vpop.f32.mrf.mxu0 }
 0x1af   :  { %v538_v50 = vadd.f32 %v775_v33, %v409_v46  ;;  %v561_v61 = vmax.f32 %v523_v58, 0.0 }
 0x1b0   :  { %v532_v35 = vpop.f32.mrf.mxu0 }
 0x1b1   :  { %v533_v52 = vadd.f32 %v532_v35, %v404_v49  ;;  %v564_v56 = vmax.f32 %v538_v50, 0.0 }
 0x1b2   :  { %v778_v36 = vpop.f32.mrf.mxu0 }
 0x1b3   :  { %v548_v43 = vadd.f32 %v778_v36, %v419_v37  ;;  %v563_v59 = vmax.f32 %v533_v52, 0.0 }
 0x1b4   :  { %v542_v38 = vpop.f32.mrf.mxu0 }
 0x1b5   :  { %v543_v47 = vadd.f32 %v542_v38, %v414_v39  ;;  %v566_v51 = vmax.f32 %v548_v43, 0.0 }
 0x1b6   :  { %v781_v40 = vpop.f32.mrf.mxu0 }
 0x1b7   :  { %v558_v41 = vadd.f32 %v781_v40, %v429_v32  ;;  %v565_v53 = vmax.f32 %v543_v47, 0.0 }
 0x1b8   :  { %v552_v42 = vpop.f32.mrf.mxu0 }
 0x1b9   :  { %v568_v44 = vmax.f32 %v558_v41, 0.0  ;;  %v553_v45 = vadd.f32 %v552_v42, %v424_v34 }
 0x1bb   :  { %v567_v48 = vmax.f32 %v553_v45, 0.0  ;;  %783 = vmatpush3.msra.mxu1 %v568_v44 }
 0x1bc   :  { %784 = vmatprep.subr.mxu1 %v807_v29 }
 0x1bd   :  { %785 = vmatpush3.msra.mxu1 %v567_v48 }
 0x1be   :  { %786 = vmatprep.subr.mxu1 %v807_v29 }
 0x1bf   :  { %787 = vmatpush3.msra.mxu1 %v566_v51 }
 0x1c0   :  { %788 = vmatprep.subr.mxu1 %v807_v29 }
 0x1c1   :  { %789 = vmatpush3.msra.mxu1 %v565_v53 }
 0x1c2   :  { %790 = vmatprep.subr.mxu1 %v807_v29 }
 0x1c3   :  { %791 = vmatpush3.msra.mxu1 %v564_v56 }
 0x1c4   :  { %792 = vmatprep.subr.mxu1 %v807_v29 }
 0x1c5   :  { %793 = vmatpush3.msra.mxu1 %v563_v59 }
 0x1c6   :  { %794 = vmatprep.subr.mxu1 %v807_v29 }
 0x1c7   :  { %795 = vmatpush3.msra.mxu1 %v562_v60 }
 0x1c8   :  { %796 = vmatprep.subr.mxu1 %v807_v29 }
 0x1c9   :  { %797 = vmatpush3.msra.mxu1 %v561_v61 }
 0x1ca   :  { %799 = vmatmul.mubr.msk.f32.vlgmr.msra.gmra.mxu1 %vm431_vm2, %v569_v62 }
 0x28a   :  { %v645_v0 = vpop.f32.mrf.mxu1 }
 0x28b   :  { %v646_v1 = vadd.f32 %v645_v0, %v574_v63 }
 0x28c   :  { %v800_v2 = vpop.f32.mrf.mxu1 }
 0x28d   :  { %650 = vst.msk [vmem:[%s1031_s9] sm:$0x3] %vm649_vm4, %v646_v1 }

</bundles_post_ra>
